<compile_context>
chip_gen: v7x
topology: tpu7x:2x2x1
jax: 0.10.0
libtpu: 0.0.40
codegen_flags: <defaults>
</compile_context>

<pallas_src>
import functools

import jax
import jax.numpy as jnp
from jax.experimental import pallas as pl
from jax.experimental.pallas import tpu as pltpu


def _round_up(x, m):
    return (x + m - 1) // m * m


def _concat_pool_kernel(x_ref, max_ref, avg_ref, *, inv_hw):
    # x_ref: (block_rows, H*W) in VMEM; reduce over the lane axis.
    x = x_ref[...]
    # Max is exact in the native dtype (no blanket f32 cast of the tile).
    mx = jnp.max(x, axis=-1)                                  # (block_rows,)
    # Mean: accumulate the sum in f32, then scale and cast back.
    s = jnp.sum(x.astype(jnp.float32), axis=-1)               # (block_rows,) f32
    # Lane-dense stores: one (1, 1, block_rows) lane-major row per output.
    max_ref[...] = mx[None, None, :].astype(max_ref.dtype)
    avg_ref[...] = (s * inv_hw)[None, None, :].astype(avg_ref.dtype)


def adaptive_concat_pool2d(x, *, target_block_bytes=8 << 20):
    """x: (N, C, H, W) -> (N, 2*C, 1, 1), matching torch.cat([mp(x), ap(x)], 1)."""
    n, c, h, w = x.shape
    r, hw = n * c, h * w
    x2 = x.reshape(r, hw)                      # free layout change for NCHW
    itemsize = jnp.dtype(x.dtype).itemsize

    # ---- block sizing against the VMEM-resident (lane-padded) footprint ----
    # Lane axis pads to a multiple of 128 in VMEM; sublane packing is dtype
    # dependent (8 rows f32, 16 bf16, 32 int8/fp8).
    sub = max(8, 32 // itemsize)
    row_bytes = _round_up(hw, 128) * itemsize

    # Default ~8 MiB blocks; cap at 12 MiB so the double-buffered footprint
    # stays comfortably inside v7x's 64 MiB/TC VMEM (128 MiB on v5e/v6e).
    tgt = min(max(int(target_block_bytes), 64 << 10), 12 << 20)
    rows_budget = max(sub, tgt // row_bytes)
    if rows_budget >= 128:
        rows_budget = rows_budget // 128 * 128   # unmasked 128-lane output stores
    else:
        rows_budget = max(sub, rows_budget // sub * sub)
    block_rows = min(rows_budget, _round_up(r, sub))

    # If the whole (non-trivial) tensor fits in one block, split it so both
    # TensorCores on multi-core parts (v7x) get work from the "parallel" axis.
    if block_rows >= r and r * row_bytes > (1 << 20):
        block_rows = max(sub, _round_up(pl.cdiv(r, 2), 128 if r >= 256 else sub))

    num_blocks = pl.cdiv(r, block_rows)

    # ---- VMEM limit from the actual double-buffered footprint --------------
    in_block_bytes = block_rows * row_bytes
    out_row_bytes = _round_up(block_rows, 128) * itemsize
    f32_temp = block_rows * _round_up(hw, 128) * 4 if itemsize < 4 else 0
    vmem_limit = (2 * (in_block_bytes + 2 * out_row_bytes)
                  + f32_temp + in_block_bytes // 4 + (2 << 20))
    vmem_limit = int(min(max(vmem_limit, 16 << 20), 60 << 20))

    kernel = functools.partial(_concat_pool_kernel, inv_hw=1.0 / hw)

    mx, av = pl.pallas_call(
        kernel,
        grid=(num_blocks,),
        in_specs=[pl.BlockSpec((block_rows, hw), lambda i: (i, 0))],
        out_specs=[
            pl.BlockSpec((1, 1, block_rows), lambda i: (i, 0, 0)),
            pl.BlockSpec((1, 1, block_rows), lambda i: (i, 0, 0)),
        ],
        out_shape=[
            jax.ShapeDtypeStruct((num_blocks, 1, block_rows), x.dtype),
            jax.ShapeDtypeStruct((num_blocks, 1, block_rows), x.dtype),
        ],
        compiler_params=pltpu.CompilerParams(
            dimension_semantics=("parallel",),
            vmem_limit_bytes=vmem_limit,
        ),
    )(x2)

    # Undo the lane-dense per-block layout; positions >= r hold ragged-block
    # don't-cares and are sliced off here (they never alias real outputs).
    mx = mx.reshape(-1)[:r].reshape(n, c)
    av = av.reshape(-1)[:r].reshape(n, c)
    # PyTorch order: max pool first, then avg pool.
    return jnp.concatenate([mx, av], axis=1).reshape(n, 2 * c, 1, 1)


def _reference(x):
    n, c = x.shape[:2]
    return jnp.concatenate(
        [jnp.max(x, axis=(2, 3)), jnp.mean(x, axis=(2, 3))], axis=1
    ).reshape(n, 2 * c, 1, 1)


if __name__ == "__main__":
    key = jax.random.PRNGKey(0)

    # Primary small test consistent with the module: N=2, C=4, H=W=16.
    x = jax.random.normal(key, (2, 4, 16, 16), dtype=jnp.float32)
    out = jax.block_until_ready(adaptive_concat_pool2d(x))
    ref = _reference(x)
    assert out.shape == (2, 8, 1, 1), out.shape
    assert jnp.allclose(out, ref, atol=1e-5, rtol=1e-5)

    # Multi-grid-step + ragged last block (r=200 rows, 64 KiB blocks -> 4 steps).
    k1, k2 = jax.random.split(key)
    x_big = jax.random.normal(k1, (2, 100, 16, 16), dtype=jnp.float32)
    out_big = jax.block_until_ready(
        adaptive_concat_pool2d(x_big, target_block_bytes=64 << 10)
    )
    assert out_big.shape == (2, 200, 1, 1), out_big.shape
    assert jnp.allclose(out_big, _reference(x_big), atol=1e-5, rtol=1e-5)

    # Non-128-multiple spatial (7x7) and non-multiple-of-8 row count (r=15).
    x_odd = jax.random.normal(k2, (3, 5, 7, 7), dtype=jnp.float32)
    out_odd = jax.block_until_ready(adaptive_concat_pool2d(x_odd))
    assert out_odd.shape == (3, 10, 1, 1), out_odd.shape
    assert jnp.allclose(out_odd, _reference(x_odd), atol=1e-5, rtol=1e-5)

    print("KERNEL_OK")
</pallas_src>

<mosaic_0001>
module attributes {stable_mosaic.version = 11 : i64} {
  func.func @_concat_pool_kernel(%arg0: i32, %arg1: memref<8x256xf32, #tpu.memory_space<vmem>>, %arg2: memref<1x1x8xf32, #tpu.memory_space<vmem>>, %arg3: memref<1x1x8xf32, #tpu.memory_space<vmem>>) attributes {dimension_semantics = [#tpu.dimension_semantics<parallel>], iteration_bounds = array<i64: 1>, scalar_prefetch = 0 : i64, scratch_operands = 0 : i64, tpu.core_type = #tpu.core_type<tc>, window_params = [{transform_indices = @transform_0, window_bounds = array<i64: 8, 256>}, {transform_indices = @transform_1, window_bounds = array<i64: 1, 1, 8>}, {transform_indices = @transform_2, window_bounds = array<i64: 1, 1, 8>}]} {
    %c0 = arith.constant 0 : index
    %c0_0 = arith.constant 0 : index
    %0 = vector.load %arg1[%c0, %c0_0] : memref<8x256xf32, #tpu.memory_space<vmem>>, vector<8x256xf32>
    %cst = arith.constant dense<0xFF800000> : vector<8xf32>
    %1 = vector.multi_reduction <maximumf>, %0, %cst [1] : vector<8x256xf32> to vector<8xf32>
    %cst_1 = arith.constant dense<0.000000e+00> : vector<8xf32>
    %2 = vector.multi_reduction <add>, %0, %cst_1 [1] : vector<8x256xf32> to vector<8xf32>
    %3 = vector.shape_cast %1 : vector<8xf32> to vector<1x1x8xf32>
    %c0_2 = arith.constant 0 : index
    %c0_3 = arith.constant 0 : index
    %c0_4 = arith.constant 0 : index
    %4 = vector.load %arg2[%c0_2, %c0_3, %c0_4] : memref<1x1x8xf32, #tpu.memory_space<vmem>>, vector<1x1x8xf32>
    tpu.vector_store %arg2[%c0_2, %c0_3, %c0_4], %3 {strides = array<i32>} : memref<1x1x8xf32, #tpu.memory_space<vmem>>, vector<1x1x8xf32>,
    %cst_5 = arith.constant 3.906250e-03 : f32
    %5 = vector.broadcast %cst_5 : f32 to vector<8xf32>
    %6 = arith.mulf %2, %5 : vector<8xf32>
    %7 = vector.shape_cast %6 : vector<8xf32> to vector<1x1x8xf32>
    %c0_6 = arith.constant 0 : index
    %c0_7 = arith.constant 0 : index
    %c0_8 = arith.constant 0 : index
    %8 = vector.load %arg3[%c0_6, %c0_7, %c0_8] : memref<1x1x8xf32, #tpu.memory_space<vmem>>, vector<1x1x8xf32>
    tpu.vector_store %arg3[%c0_6, %c0_7, %c0_8], %7 {strides = array<i32>} : memref<1x1x8xf32, #tpu.memory_space<vmem>>, vector<1x1x8xf32>,
    return
  }
  func.func @transform_0(%arg0: i32) -> (i32, i32) {
    %c0_i32 = arith.constant 0 : i32
    %c0_i32_0 = arith.constant 0 : i32
    return %arg0, %c0_i32 : i32, i32
  }
  func.func @transform_1(%arg0: i32) -> (i32, i32, i32) {
    %c0_i32 = arith.constant 0 : i32
    %c0_i32_0 = arith.constant 0 : i32
    %c0_i32_1 = arith.constant 0 : i32
    return %arg0, %c0_i32, %c0_i32_0 : i32, i32, i32
  }
  func.func @transform_2(%arg0: i32) -> (i32, i32, i32) {
    %c0_i32 = arith.constant 0 : i32
    %c0_i32_0 = arith.constant 0 : i32
    %c0_i32_1 = arith.constant 0 : i32
    return %arg0, %c0_i32, %c0_i32_0 : i32, i32, i32
  }
}

</mosaic_0001>

<bundles_post_ra>
// kernel: tpu_custom_call.1
= control target key start
LH: loop header
LB: loop body
LE: loop exit
PB: predicated region body
PF: predicated region fallthrough
CT: control target
= control target key end

     0   :  { %8 = vsyncpa [#allocation3], 0  ;;  %s218_s0 = inlined_call_operand.hbm [shape: f32[8,256], index: 0, kind: input, shape index: {}]   ;;  %s219_s1 = inlined_call_operand.hbm [shape: f32[1,1,8], index: 1, kind: output, shape index: {0}]   ;;  %s220_s2 = inlined_call_operand.hbm [shape: f32[1,1,8], index: 2, kind: output, shape index: {1}]  }
   0x1   :  { %9 = vsyncpa [#allocation4], 0 }
   0x2   :  { %10 = vsyncpa [#allocation7], 0  ;;  %s154_s9 = smov [#allocation2]   ;;  %s82_s13 = scalar_lea.hbm %s218_s0, 256 }
   0x3   :  { %s17_s10 = sshll.u32 %s154_s9, 4  ;;  %p83_p0 = scmp.ne.s32.totalorder %s218_s0, %s82_s13  ;;  %s18_s10 = int_to_ptr.vmem [resolvable:$true] %s17_s10 }
   0x4   :  { %p86_p1 = scmp.lt.u32.totalorder %s82_s13, %s218_s0 }
   0x6   :  { %p88_p2 = pnand %p86_p1, %p83_p0 }
   0x8   :  { %91 = shalt.err (!%p88_p2)
}
   0x9   :  { %s92_s18 = scalar_lea.vmem %s18_s10, 256  ;;  %p97_p4 = scmp.lt.s32.totalorder %s18_s10, %s18_s10 }
   0xa   :  { %p93_p3 = scmp.ne.s32.totalorder %s18_s10, %s92_s18  ;;  %p98_p5 = scmp.lt.s32.totalorder %s92_s18, %s92_s18 }
   0xc   :  { %p99_p6 = por %p98_p5, %p97_p4 }
   0xe   :  { %p100_p7 = pnand %p99_p6, %p93_p3 }
  0x10   :  { %103 = shalt.err (!%p100_p7)
}
  0x11   :  { %20 = dma.hbm_to_vmem [thread:$0]  %s218_s0, 256, %s18_s10, [#allocation3]  }
  0x12   :  { %148 = dma.done.wait [#allocation3], 256  }
  0x13   :  { %149 = vsyncadd [#allocation3], 4294967040  ;;  %v24_v0 = vld [vmem:[#allocation2] sm:$0xff]  ;;  %v25_v1 = vld [vmem:[#allocation2 + $0x8] sm:$0xff]  ;;  %v33_v4 = vlaneseq  ;;  %s155_s21 = smov [#allocation6]   ;;  %vm40_vm0 = vcmask 57344  }
  0x14   :  { %v29_v2 = vadd.f32 %v25_v1, %v24_v0  ;;  %v26_v3 = vmax.f32 %v24_v0, %v25_v1  ;;  %s66_s22 = sshll.u32 %s155_s21, 4  ;;  %s156_s23 = smov [#allocation5]   ;;  %s67_s22 = int_to_ptr.vmem [resolvable:$true] %s66_s22 }
  0x15   :  { %v34_v5 = vand.u32 127, %v33_v4  ;;  %v36_v6 = vshrl.u32 %v33_v4, 7  ;;  %s56_s24 = sshll.u32 %s156_s23, 4  ;;  %s104_s0 = scalar_lea.vmem %s67_s22, 16  ;;  %s184_s24 = int_to_ptr.vmem [resolvable:$true] %s56_s24 }
  0x16   :  { %30 = vadd.xlane.f32.xlu0 %v29_v2  ;;  %p105_p8 = scmp.ne.s32.totalorder %s67_s22, %s104_s0  ;;  %s108_s25 = scalar_lea.vmem %s67_s22, 32 }
  0x17   :  { %v37_v7 = vsub.s32 %v34_v5, %v36_v6  ;;  %p109_p9 = scmp.lt.s32.totalorder %s67_s22, %s67_s22  ;;  %p110_p10 = scmp.lt.s32.totalorder %s108_s25, %s104_s0 }
  0x19   :  { %p111_p11 = por %p110_p10, %p109_p9 }
  0x1a   :  { %27 = vmax.xlane.f32.xlu0 %v26_v3 }
  0x1b   :  { %p112_p12 = pnand %p111_p11, %p105_p8 }
  0xa3   :  { %v31_v8 = vpop.xlane.xlu0 %30 }
  0xa4   :  { %v42_v9 = vmul.f32 0.00390625, %v31_v8 }
  0xa6   :  { %v47_v10 = vrot.slane %v42_v9, %v37_v7 }
  0xa7   :  { %v28_v11 = vpop.xlane.xlu0 %27 }
  0xa8   :  { %v38_v12 = vrot.slane %v28_v11, %v37_v7  ;;  %49 = vst.msk [vmem:[#allocation6] sm:$0x1] %vm40_vm0, %v47_v10 }
  0xa9   :  { %115 = shalt.err (!%p112_p12)
}
  0xaa   :  { %s116_s28 = scalar_lea.hbm %s220_s2, 16 }
  0xab   :  { %p117_p13 = scmp.ne.s32.totalorder %s220_s2, %s116_s28  ;;  %p120_p0 = scmp.lt.u32.totalorder %s116_s28, %s220_s2 }
  0xad   :  { %p122_p1 = pnand %p120_p0, %p117_p13 }
  0xaf   :  { %125 = shalt.err (!%p122_p1)
}
  0xb0   :  { %69 = dma.vmem_to_hbm [thread:$0]  %s67_s22, 16, %s220_s2, [#allocation7]   ;;  %41 = vst.msk [vmem:[#allocation5] sm:$0x1] %vm40_vm0, %v38_v12 }
  0xb1   :  { %s126_s7 = scalar_lea.vmem %s184_s24, 16  ;;  %s130_s8 = scalar_lea.vmem %s184_s24, 32 }
  0xb2   :  { %p127_p2 = scmp.ne.s32.totalorder %s184_s24, %s126_s7  ;;  %p131_p3 = scmp.lt.s32.totalorder %s184_s24, %s184_s24 }
  0xb3   :  { %p132_p4 = scmp.lt.s32.totalorder %s130_s8, %s126_s7 }
  0xb5   :  { %p133_p5 = por %p132_p4, %p131_p3 }
  0xb7   :  { %p134_p6 = pnand %p133_p5, %p127_p2 }
  0xb9   :  { %137 = shalt.err (!%p134_p6)
}
  0xba   :  { %s138_s11 = scalar_lea.hbm %s219_s1, 16 }
  0xbb   :  { %p139_p7 = scmp.ne.s32.totalorder %s219_s1, %s138_s11  ;;  %p142_p8 = scmp.lt.u32.totalorder %s138_s11, %s219_s1 }
  0xbd   :  { %p144_p9 = pnand %p142_p8, %p139_p7 }
  0xbf   :  { %147 = shalt.err (!%p144_p9)
}
  0xc0   :  { %59 = dma.vmem_to_hbm [thread:$0]  %s184_s24, 16, %s219_s1, [#allocation4]  }
  0xc1   :  { %150 = dma.done.wait [#allocation4], 16  }
  0xc2   :  { %151 = vsyncadd [#allocation4], 4294967280 }
  0xc3   :  { %152 = dma.done.wait [#allocation7], 16  }
  0xc4   :  { %153 = vsyncadd [#allocation7], 4294967280 }
  0xc5   :  { %76 = vsyncpa [#allocation3], 1 }
  0xc6   :  { %77 = vsyncpa [#allocation4], 1 }
  0xc7   :  { %78 = vsyncpa [#allocation7], 1 }

</bundles_post_ra>
